<compile_context>
chip_gen: v6e
topology: v6e:2x2x1
jax: 0.10.0
libtpu: 0.0.40
codegen_flags: <defaults>
</compile_context>

<pallas_src>
import math

import jax
import jax.numpy as jnp
from jax.experimental import pallas as pl
from jax.experimental.pallas import tpu as pltpu

_MiB = 1024 * 1024


def build_sinusoidal_encoding(d_model: int, max_len: int = 5000) -> jnp.ndarray:
    """Deterministic buffer setup, exactly mirroring the PyTorch __init__."""
    position = jnp.arange(0, max_len, dtype=jnp.float32)[:, None]          # (max_len, 1)
    div_term = jnp.exp(
        jnp.arange(0, d_model, 2, dtype=jnp.float32) * (-math.log(10000.0) / d_model)
    )                                                                       # (d_model//2,)
    angles = position * div_term                                            # (max_len, d_model//2)
    enc = jnp.zeros((max_len, d_model), dtype=jnp.float32)
    enc = enc.at[:, 0::2].set(jnp.sin(angles))
    enc = enc.at[:, 1::2].set(jnp.cos(angles))
    return enc[None, :, :]                                                  # (1, max_len, d_model)


def _pe_add_kernel(x_ref, pe_ref, o_ref):
    # Broadcast add on the VPU; accumulate in f32 (PE buffer is f32), cast back.
    o_ref[...] = (x_ref[...].astype(jnp.float32)
                  + pe_ref[...].astype(jnp.float32)).astype(o_ref.dtype)


def _cdiv(a: int, b: int) -> int:
    return (a + b - 1) // b


def _round_up(a: int, m: int) -> int:
    return _cdiv(a, m) * m


def _tpu_vmem_capacity_bytes() -> int:
    try:
        info = pltpu.get_tpu_info()
        cap = getattr(info, "vmem_capacity_bytes", None)
        if cap:
            return int(cap)
    except Exception:
        pass
    return 128 * _MiB


def _pick_lane_width(n: int):
    """A multiple-of-128 divisor of n, preferring >=8 rows (dense sublanes)."""
    if n % 128 != 0:
        return None
    cands = [c for c in range(128, min(n, 32768) + 1, 128) if n % c == 0]
    if not cands:
        return None
    dense = [c for c in cands if (n // c) >= 8]      # enough rows for 8-multiple row tiles
    pool = dense if dense else cands
    capped = [c for c in pool if c <= 4096]
    return max(capped) if capped else min(pool)


def _plan(B: int, S: int, D: int, x_dtype) -> dict:
    """Generation-aware tiling plan (pure host-side integer arithmetic)."""
    xbytes = jnp.dtype(x_dtype).itemsize
    N = S * D
    vmem_cap = _tpu_vmem_capacity_bytes()
    vmem_budget = min(48 * _MiB, vmem_cap // 2)          # ~32 MiB on v7x, ~48 MiB on v5e/v6e
    pipeline_budget = vmem_budget - 2 * _MiB             # headroom for compiler scratch
    target_block_bytes = 4 * _MiB if vmem_cap <= 64 * _MiB else 8 * _MiB
    total_bytes = B * N * xbytes

    C = _pick_lane_width(N)
    if C is not None:
        R = N // C
        # Rows per block, limited by both the x-block byte target and VMEM budget.
        per_row_pipe = C * (4 * xbytes + 8)      # x+out double-buffered + f32 PE double-buffered
        rows_budget = max(1, pipeline_budget // per_row_pipe)
        rows_target = max(1, target_block_bytes // (C * xbytes))
        rows = min(rows_budget, rows_target)
        if R <= 8 or rows >= R:
            tr = R                               # full dim (always legal)
        else:
            tr = max(8, (rows // 8) * 8)         # multiple of 8 -> dense sublanes

        # Group whole batch rows into one block when a single row range fits.
        nb = 1
        if tr == R and B > 1:
            Rp = _round_up(R, 8)
            per_batch_blk = Rp * C * xbytes
            nb_target = max(1, target_block_bytes // per_batch_blk)
            nb_budget = max(1, (pipeline_budget - 8 * Rp * C) // (4 * per_batch_blk))
            nb = min(B, nb_target, nb_budget)

        row_tiles = _cdiv(R, tr)
        batch_tiles = _cdiv(B, nb)

        # Keep >= 2 grid steps on big inputs so both v7x TensorCores get work.
        if row_tiles * batch_tiles == 1 and total_bytes >= 4 * _MiB:
            if B >= 2:
                nb = _cdiv(B, 2)
                batch_tiles = _cdiv(B, nb)
            elif R > 8:
                tr = max(8, _round_up(_cdiv(R, 2), 8))
                row_tiles = _cdiv(R, tr)

        trp = _round_up(tr, 8)                    # sublane-padded rows per block
        blocks = 2 * (2 * nb * trp * C * xbytes + trp * C * 4)
        vmem_limit = int(max(16 * _MiB, min(vmem_cap - 16 * _MiB, blocks + 4 * _MiB)))
        return dict(kind="tiled3d", C=C, R=R, tr=tr, nb=nb,
                    row_tiles=row_tiles, batch_tiles=batch_tiles,
                    vmem_limit=vmem_limit, xbytes=xbytes)

    # ---- Fallback: S*D not a multiple of 128 -> lane-dense 2-D (B, S*D) ----
    tn = N if N <= 4096 else 4096                 # full width or multiple-of-128 tile
    if B <= 8:
        tb = B
    else:
        rows_target = max(8, target_block_bytes // (tn * xbytes))
        tb = B if rows_target >= B else max(8, (rows_target // 8) * 8)

    def _blk(tb_):
        return 2 * (2 * _round_up(tb_, 8) * tn * xbytes + 8 * tn * 4)

    while _blk(tb) > pipeline_budget and tb > 8:
        tb = max(8, ((tb // 2) // 8) * 8)
    lane_tiles = _cdiv(N, tn)
    batch_tiles = _cdiv(B, tb)
    if lane_tiles * batch_tiles == 1 and total_bytes >= 4 * _MiB and B > 8:
        tb = max(8, _round_up(_cdiv(B, 2), 8))
        batch_tiles = _cdiv(B, tb)
    blocks = _blk(tb)
    vmem_limit = int(max(16 * _MiB, min(vmem_cap - 16 * _MiB, blocks + 4 * _MiB)))
    return dict(kind="tiled2d", tn=tn, tb=tb,
                lane_tiles=lane_tiles, batch_tiles=batch_tiles,
                vmem_limit=vmem_limit, xbytes=xbytes)


class PositionalEncodingPallas:
    """JAX/Pallas port of the PyTorch PositionalEncoding module."""

    def __init__(self, d_model: int, max_len: int = 5000):
        self.d_model = int(d_model)
        self.max_len = int(max_len)
        # f32 buffer, exactly mirroring the PyTorch register_buffer.
        self.encoding = build_sinusoidal_encoding(self.d_model, self.max_len)
        # Hoisted/cached PE prep: (seq_len, lane_width) -> pre-sliced f32 table.
        self._pe_cache = {}

    def _pe_table(self, S: int, lane_width):
        key = (S, lane_width)
        tbl = self._pe_cache.get(key)
        if tbl is None:
            flat = self.encoding[0, :S, :].reshape(1, S * self.d_model)     # (1, N) f32
            tbl = flat if lane_width is None else flat.reshape(-1, lane_width)
            self._pe_cache[key] = tbl
        return tbl

    def __call__(self, x: jnp.ndarray, *, donate_x: bool = False) -> jnp.ndarray:
        B, S, D = x.shape
        assert D == self.d_model, "d_model mismatch"
        assert S <= self.max_len, "sequence longer than max_len"
        N = S * D
        plan = _plan(B, S, D, x.dtype)
        itemsize = plan["xbytes"]

        cost = pl.CostEstimate(
            flops=B * N,
            transcendentals=0,
            bytes_accessed=2 * B * N * itemsize + N * 4,   # x read + out write + PE read once
        )
        io_alias = {0: 0} if donate_x else {}

        if plan["kind"] == "tiled3d":
            C, R, tr, nb = plan["C"], plan["R"], plan["tr"], plan["nb"]
            pe = self._pe_table(S, C)                       # (R, C) f32
            x3 = x.reshape(B, R, C)                         # free reshape (contiguous)
            out = pl.pallas_call(
                _pe_add_kernel,
                out_shape=jax.ShapeDtypeStruct((B, R, C), x.dtype),
                grid=(plan["row_tiles"], plan["batch_tiles"]),   # batch innermost -> PE reused
                in_specs=[
                    pl.BlockSpec((nb, tr, C), lambda t, b: (b, t, 0)),   # x block
                    pl.BlockSpec((tr, C), lambda t, b: (t, 0)),          # PE block (ignores batch)
                ],
                out_specs=pl.BlockSpec((nb, tr, C), lambda t, b: (b, t, 0)),
                compiler_params=pltpu.CompilerParams(
                    dimension_semantics=("parallel", "parallel"),
                    vmem_limit_bytes=plan["vmem_limit"],
                ),
                cost_estimate=cost,
                input_output_aliases=io_alias,
            )(x3, pe)
            return out.reshape(B, S, D)

        # Fallback 2-D layout (S*D not a multiple of 128).
        tn, tb = plan["tn"], plan["tb"]
        pe = self._pe_table(S, None)                        # (1, N) f32
        x2 = x.reshape(B, N)
        out = pl.pallas_call(
            _pe_add_kernel,
            out_shape=jax.ShapeDtypeStruct((B, N), x.dtype),
            grid=(plan["lane_tiles"], plan["batch_tiles"]),
            in_specs=[
                pl.BlockSpec((tb, tn), lambda t, b: (b, t)),
                pl.BlockSpec((1, tn), lambda t, b: (0, t)),
            ],
            out_specs=pl.BlockSpec((tb, tn), lambda t, b: (b, t)),
            compiler_params=pltpu.CompilerParams(
                dimension_semantics=("parallel", "parallel"),
                vmem_limit_bytes=plan["vmem_limit"],
            ),
            cost_estimate=cost,
            input_output_aliases=io_alias,
        )(x2, pe)
        return out.reshape(B, S, D)


if __name__ == "__main__":
    # Small shapes consistent with the module: batch=2, seq=8, d_model=32.
    B, S, D = 2, 8, 32
    MAX_LEN = 5000

    key = jax.random.PRNGKey(0)
    x = jax.random.normal(key, (B, S, D), dtype=jnp.float32)

    module = PositionalEncodingPallas(D, MAX_LEN)
    out = module(x)
    out = jax.block_until_ready(out)

    # Sanity check against the pure-JAX reference of the PyTorch forward.
    ref = x + module.encoding[:, :S, :]
    assert out.shape == (B, S, D)
    assert jnp.allclose(out, ref.astype(out.dtype), atol=1e-6, rtol=1e-6)

    print("KERNEL_OK")
</pallas_src>

<mosaic_0001>
module attributes {stable_mosaic.version = 11 : i64} {
  func.func @_pe_add_kernel(%arg0: i32, %arg1: i32, %arg2: memref<2x1x256xf32, #tpu.memory_space<vmem>>, %arg3: memref<1x256xf32, #tpu.memory_space<vmem>>, %arg4: memref<2x1x256xf32, #tpu.memory_space<vmem>>) attributes {dimension_semantics = [#tpu.dimension_semantics<parallel>, #tpu.dimension_semantics<parallel>], iteration_bounds = array<i64: 1, 1>, scalar_prefetch = 0 : i64, scratch_operands = 0 : i64, tpu.core_type = #tpu.core_type<tc>, window_params = [{transform_indices = @transform_0, window_bounds = array<i64: 2, 1, 256>}, {transform_indices = @transform_1, window_bounds = array<i64: 1, 256>}, {transform_indices = @transform_2, window_bounds = array<i64: 2, 1, 256>}]} {
    %c0 = arith.constant 0 : index
    %c0_0 = arith.constant 0 : index
    %c0_1 = arith.constant 0 : index
    %0 = vector.load %arg2[%c0, %c0_0, %c0_1] : memref<2x1x256xf32, #tpu.memory_space<vmem>>, vector<2x1x256xf32>
    %c0_2 = arith.constant 0 : index
    %c0_3 = arith.constant 0 : index
    %1 = vector.load %arg3[%c0_2, %c0_3] : memref<1x256xf32, #tpu.memory_space<vmem>>, vector<1x256xf32>
    %2 = vector.shape_cast %1 : vector<1x256xf32> to vector<1x1x256xf32>
    %3 = vector.broadcast %2 : vector<1x1x256xf32> to vector<2x1x256xf32>
    %4 = arith.addf %0, %3 : vector<2x1x256xf32>
    %c0_4 = arith.constant 0 : index
    %c0_5 = arith.constant 0 : index
    %c0_6 = arith.constant 0 : index
    %5 = vector.load %arg4[%c0_4, %c0_5, %c0_6] : memref<2x1x256xf32, #tpu.memory_space<vmem>>, vector<2x1x256xf32>
    tpu.vector_store %arg4[%c0_4, %c0_5, %c0_6], %4 {strides = array<i32>} : memref<2x1x256xf32, #tpu.memory_space<vmem>>, vector<2x1x256xf32>,
    return
  }
  func.func @transform_0(%arg0: i32, %arg1: i32) -> (i32, i32, i32) {
    %c0_i32 = arith.constant 0 : i32
    %c0_i32_0 = arith.constant 0 : i32
    return %arg1, %arg0, %c0_i32 : i32, i32, i32
  }
  func.func @transform_1(%arg0: i32, %arg1: i32) -> (i32, i32) {
    %c0_i32 = arith.constant 0 : i32
    %c0_i32_0 = arith.constant 0 : i32
    return %arg0, %c0_i32 : i32, i32
  }
  func.func @transform_2(%arg0: i32, %arg1: i32) -> (i32, i32, i32) {
    %c0_i32 = arith.constant 0 : i32
    %c0_i32_0 = arith.constant 0 : i32
    return %arg1, %arg0, %c0_i32 : i32, i32, i32
  }
}

</mosaic_0001>

<bundles_post_ra>
// kernel: tpu_custom_call.1
= control target key start
LH: loop header
LB: loop body
LE: loop exit
PB: predicated region body
PF: predicated region fallthrough
CT: control target
= control target key end

     0   :  { %7 = vsyncpa [#allocation3], 0  ;;  %s173_s0 = inlined_call_operand.hbm [shape: f32[2,1,256], index: 0, kind: input, shape index: {}]   ;;  %s174_s1 = inlined_call_operand.hbm [shape: f32[1,256], index: 1, kind: input, shape index: {}]   ;;  %s175_s2 = inlined_call_operand.hbm [shape: f32[2,1,256], index: 2, kind: output, shape index: {}]  }
   0x1   :  { %8 = vsyncpa [#allocation6], 0 }
   0x2   :  { %9 = vsyncpa [#allocation4], 0  ;;  %s138_s9 = smov [#allocation2]  }
   0x3   :  { %s15_s10 = sshll.u32 %s138_s9, 4  ;;  %s16_s10 = int_to_ptr.vmem [resolvable:$true] %s15_s10 }
   0x4   :  { %s80_s11 = scalar_lea.vmem %s16_s10, 64  ;;  %p85_p1 = scmp.lt.s32.totalorder %s16_s10, %s16_s10 }
   0x5   :  { %p81_p0 = scmp.ne.s32.totalorder %s16_s10, %s80_s11  ;;  %p86_p2 = scmp.lt.s32.totalorder %s80_s11, %s80_s11 }
   0x7   :  { %p87_p3 = por %p86_p2, %p85_p1 }
   0x9   :  { %p88_p4 = pnand %p87_p3, %p81_p0 }
   0xb   :  { %91 = shalt.err (!%p88_p4)
}
   0xc   :  { %s139_s12 = smov 32   ;;  %s140_s13 = smov 2  }
   0xd   :  { %21 = dma.hbm_to_vmem [thread:$0]  %s173_s0, 64, %s16_s10, [#allocation3], %s139_s12, %s139_s12, %s140_s13  }
   0xe   :  { %s141_s16 = smov [#allocation5]  }
   0xf   :  { %s28_s17 = sshll.u32 %s141_s16, 4  ;;  %s29_s17 = int_to_ptr.vmem [resolvable:$true] %s28_s17 }
  0x10   :  { %s100_s18 = scalar_lea.vmem %s29_s17, 32  ;;  %p105_p6 = scmp.lt.s32.totalorder %s29_s17, %s29_s17 }
  0x11   :  { %p101_p5 = scmp.ne.s32.totalorder %s29_s17, %s100_s18  ;;  %p106_p7 = scmp.lt.s32.totalorder %s100_s18, %s100_s18 }
  0x13   :  { %p107_p8 = por %p106_p7, %p105_p6 }
  0x15   :  { %p108_p9 = pnand %p107_p8, %p101_p5 }
  0x17   :  { %111 = shalt.err (!%p108_p9)
}
  0x18   :  { %31 = dma.hbm_to_vmem [thread:$0]  %s174_s1, 32, %s29_s17, [#allocation6]  }
  0x19   :  { %132 = dma.done.wait [#allocation3], 64  }
  0x1a   :  { %133 = vsyncadd [#allocation3], 4294967232 }
  0x1b   :  { %134 = dma.done.wait [#allocation6], 32  }
  0x1c   :  { %135 = vsyncadd [#allocation6], 4294967264  ;;  %v43_v0 = vlaneseq  ;;  %s142_s0 = smov [#allocation7]   ;;  %v38_v1 = vld [vmem:[#allocation2] sm:$0x3] }
  0x1d   :  { %s54_s21 = sshll.u32 %s142_s0, 4  ;;  %v40_v2 = vld [vmem:[#allocation5] sm:$0x3]  ;;  %v39_v3 = vld [vmem:[#allocation2 + $0x2] sm:$0x3]  ;;  %s55_s21 = int_to_ptr.vmem [resolvable:$true] %s54_s21 }
  0x1e   :  { %vm45_vm0 = vcmp.lt.s32.totalorder %v43_v0, 256  ;;  %v41_v4 = vadd.f32 %v40_v2, %v38_v1  ;;  %v42_v5 = vadd.f32 %v40_v2, %v39_v3  ;;  %s112_s22 = scalar_lea.vmem %s55_s21, 64  ;;  %p117_p11 = scmp.lt.s32.totalorder %s55_s21, %s55_s21 }
  0x1f   :  { %p113_p10 = scmp.ne.s32.totalorder %s55_s21, %s112_s22  ;;  %p118_p12 = scmp.lt.s32.totalorder %s112_s22, %s112_s22 }
  0x20   :  { %47 = vst.msk [vmem:[#allocation7] sm:$0x3] %vm45_vm0, %v41_v4  ;;  %48 = vst.msk [vmem:[#allocation7 + $0x2] sm:$0x3] %vm45_vm0, %v42_v5 }
  0x21   :  { %p119_p13 = por %p118_p12, %p117_p11 }
  0x23   :  { %p120_p0 = pnand %p119_p13, %p113_p10 }
  0x25   :  { %123 = shalt.err (!%p120_p0)
}
  0x26   :  { %60 = dma.vmem_to_hbm [thread:$0]  %s55_s21, 64, %s175_s2, [#allocation4], %s139_s12, %s139_s12, %s140_s13  }
  0x27   :  { %136 = dma.done.wait [#allocation4], 64  }
  0x28   :  { %137 = vsyncadd [#allocation4], 4294967232 }
  0x29   :  { %64 = vsyncpa [#allocation3], 1 }
  0x2a   :  { %65 = vsyncpa [#allocation6], 1 }
  0x2b   :  { %66 = vsyncpa [#allocation4], 1 }

</bundles_post_ra>
